<compile_context>
chip_gen: v7x
topology: tpu7x:2x2x1
jax: 0.10.0
libtpu: 0.0.40
codegen_flags: <defaults>
</compile_context>

<pallas_src>
import functools
import math

import jax
import jax.numpy as jnp
import numpy as np
from jax.experimental import pallas as pl
from jax.experimental.pallas import tpu as pltpu

BN_EPS = 1e-5
LANE = 128            # vreg lane width
TILE_M = 256          # rows per grid step; multiple of 8 (f32 sublane).  A bf16 patch
                      # tile (TILE_M x kdim_p) double-buffered + the f32 y tile stays far
                      # below the 32 MiB scoped / 64 MiB physical VMEM of v7x.
VMEM_LIMIT = 48 * 1024 * 1024   # <= 48 MiB: safe headroom on v5e/v6e (128 MiB) and v7x (64 MiB)


def _round_up(v, m):
    return ((v + m - 1) // m) * m


# ----------------------------- Pallas kernels ---------------------------------------

def _matmul_stats_kernel(p_ref, w_ref, y_ref, stats_ref):
    """Pass 1: y = patches @ W (bf16 in, f32 accumulate) + per-tile channel sum/sumsq."""
    y = jnp.dot(p_ref[...], w_ref[...], preferred_element_type=jnp.float32)
    y_ref[...] = y
    stats_ref[...] = jnp.zeros_like(stats_ref)
    stats_ref[0:1, 0:1, :] = jnp.sum(y, axis=0, keepdims=True)[None]
    stats_ref[0:1, 1:2, :] = jnp.sum(y * y, axis=0, keepdims=True)[None]


def _bn_relu_kernel(y_ref, scale_ref, shift_ref, o_ref):
    """Pass 2: fused BN affine + ReLU: max(y*scale + shift, 0)."""
    o_ref[...] = jnp.maximum(y_ref[...] * scale_ref[...] + shift_ref[...], 0.0
                             ).astype(o_ref.dtype)


# ------------------------------ wrapper helpers --------------------------------------

def _im2col_nhwc(x_nhwc, k, stride, pad):
    """NHWC im2col without the expensive transpose.  Flatten order (cin, ki*K+kj)
    matches conv_w.reshape(Cout, Cin*K*K)."""
    n, h, w, c = x_nhwc.shape
    ho = (h + 2 * pad - k) // stride + 1
    wo = (w + 2 * pad - k) // stride + 1
    xp = jnp.pad(x_nhwc, ((0, 0), (pad, pad), (pad, pad), (0, 0)))
    slabs = []
    for ki in range(k):
        for kj in range(k):
            slabs.append(xp[:, ki:ki + stride * (ho - 1) + 1:stride,
                             kj:kj + stride * (wo - 1) + 1:stride, :])
    patches = jnp.stack(slabs, axis=-1)                 # [N, Ho, Wo, Cin, K*K]
    return patches.reshape(n * ho * wo, c * k * k), (n, ho, wo)


def _conv_bn_relu_block(x_nhwc, conv_w, bn_gamma, bn_beta, *, k, stride, pad, out_dtype):
    """One Conv2d(k, stride, pad) -> BatchNorm2d(train) -> ReLU block, NHWC in/out."""
    cout = conv_w.shape[0]
    cin = x_nhwc.shape[-1]
    kdim = cin * k * k

    patches, (n, ho, wo) = _im2col_nhwc(x_nhwc.astype(jnp.bfloat16), k, stride, pad)
    m = n * ho * wo

    # Pad to lane/sublane-friendly shapes (zero padding contributes nothing).
    kdim_p = _round_up(kdim, LANE)
    cout_p = _round_up(cout, LANE)
    m_p = _round_up(m, TILE_M)
    n_tiles = m_p // TILE_M

    patches = jnp.pad(patches, ((0, m_p - m), (0, kdim_p - kdim)))
    w_mat = conv_w.reshape(cout, kdim).T.astype(jnp.bfloat16)            # [kdim, cout]
    w_mat = jnp.pad(w_mat, ((0, kdim_p - kdim), (0, cout_p - cout)))
    gamma_p = jnp.pad(bn_gamma.astype(jnp.float32), (0, cout_p - cout))
    beta_p = jnp.pad(bn_beta.astype(jnp.float32), (0, cout_p - cout))

    cost = pl.CostEstimate(
        flops=2 * m_p * kdim_p * cout_p,
        transcendentals=0,
        bytes_accessed=m_p * kdim_p * 2 + kdim_p * cout_p * 2 + m_p * cout_p * 4)

    # -------- pass 1: tiled matmul + per-tile partial BN statistics --------
    y_pre, partial_stats = pl.pallas_call(
        _matmul_stats_kernel,
        out_shape=(jax.ShapeDtypeStruct((m_p, cout_p), jnp.float32),
                   jax.ShapeDtypeStruct((n_tiles, 8, cout_p), jnp.float32)),
        grid=(n_tiles,),
        in_specs=[pl.BlockSpec((TILE_M, kdim_p), lambda i: (i, 0)),
                  pl.BlockSpec((kdim_p, cout_p), lambda i: (0, 0))],
        out_specs=[pl.BlockSpec((TILE_M, cout_p), lambda i: (i, 0)),
                   pl.BlockSpec((1, 8, cout_p), lambda i: (i, 0, 0))],
        compiler_params=pltpu.CompilerParams(
            dimension_semantics=("parallel",), vmem_limit_bytes=VMEM_LIMIT),
        cost_estimate=cost,
    )(patches, w_mat)

    # -------- fold BatchNorm into a single per-channel scale/shift (tiny, in JAX) ----
    # Stats are over the TRUE m rows (zero-padded rows contribute 0 to both sums).
    # Conv bias is omitted on purpose: training-mode BN mean subtraction cancels a
    # per-channel constant bias exactly.
    s = jnp.sum(partial_stats[:, 0, :], axis=0)
    sq = jnp.sum(partial_stats[:, 1, :], axis=0)
    mean = s / m
    var = jnp.maximum(sq / m - mean * mean, 0.0)     # biased variance (PyTorch training)
    scale = gamma_p * jax.lax.rsqrt(var + BN_EPS)
    shift = beta_p - mean * scale

    # -------- pass 2: fused scale/shift + ReLU epilogue --------
    out_flat = pl.pallas_call(
        _bn_relu_kernel,
        out_shape=jax.ShapeDtypeStruct((m_p, cout_p), out_dtype),
        grid=(n_tiles,),
        in_specs=[pl.BlockSpec((TILE_M, cout_p), lambda i: (i, 0)),
                  pl.BlockSpec((1, cout_p), lambda i: (0, 0)),
                  pl.BlockSpec((1, cout_p), lambda i: (0, 0))],
        out_specs=pl.BlockSpec((TILE_M, cout_p), lambda i: (i, 0)),
        compiler_params=pltpu.CompilerParams(
            dimension_semantics=("parallel",), vmem_limit_bytes=VMEM_LIMIT),
    )(y_pre, scale.reshape(1, cout_p), shift.reshape(1, cout_p))

    return out_flat[:m, :cout].reshape(n, ho, wo, cout)


@functools.partial(jax.jit, static_argnames=("k", "stride", "pad"))
def multiple_conv2d_block_forward(x_nchw, conv_ws, bn_gammas, bn_betas,
                                  *, k=3, stride=1, pad=1):
    """Forward pass of Multiple_Conv2D_Block.

    x_nchw: [N, Cin, H, W].  conv_ws[i]: [Cout_i, Cin_i, K, K].  Returns NCHW f32.
    Conv biases are not needed: with training-mode BatchNorm directly after each conv,
    a per-channel bias is cancelled exactly by the mean subtraction.
    """
    x = jnp.transpose(x_nchw, (0, 2, 3, 1))          # NCHW -> NHWC once
    nblocks = len(conv_ws)
    for i in range(nblocks):
        out_dtype = jnp.float32 if i == nblocks - 1 else jnp.bfloat16
        x = _conv_bn_relu_block(x, conv_ws[i], bn_gammas[i], bn_betas[i],
                                k=k, stride=stride, pad=pad, out_dtype=out_dtype)
    return jnp.transpose(x, (0, 3, 1, 2))            # NHWC -> NCHW at the boundary only


# ------------------------------ f32 reference ---------------------------------------

def _reference(x, conv_ws, conv_bs, bn_gammas, bn_betas, *, k, stride, pad):
    y = x.astype(jnp.float32)
    for w, b, g, bt in zip(conv_ws, conv_bs, bn_gammas, bn_betas):
        y = jax.lax.conv_general_dilated(
            y, w.astype(jnp.float32), window_strides=(stride, stride),
            padding=((pad, pad), (pad, pad)),
            dimension_numbers=("NCHW", "OIHW", "NCHW"))
        y = y + b.reshape(1, -1, 1, 1)
        mean = jnp.mean(y, axis=(0, 2, 3), keepdims=True)
        var = jnp.mean((y - mean) ** 2, axis=(0, 2, 3), keepdims=True)
        y = (y - mean) * jax.lax.rsqrt(var + BN_EPS)
        y = y * g.reshape(1, -1, 1, 1) + bt.reshape(1, -1, 1, 1)
        y = jnp.maximum(y, 0.0)
    return y


if __name__ == "__main__":
    # Multiple_Conv2D_Block(num_convs=2, in_channels=4, out_channels=8,
    #                       kernel_size=3, stride=1, padding=1, bias=True)
    NUM_CONVS, CIN, COUT, K, STRIDE, PAD = 2, 4, 8, 3, 1, 1
    N, H, W = 2, 16, 16

    key = jax.random.PRNGKey(0)
    kx, key = jax.random.split(key)
    x = jax.random.normal(kx, (N, CIN, H, W), dtype=jnp.float32)

    conv_ws, conv_bs, gammas, betas = [], [], [], []
    cin = CIN
    for _ in range(NUM_CONVS):
        kw, kb, key = jax.random.split(key, 3)
        fan_in = cin * K * K
        bound = 1.0 / math.sqrt(fan_in)            # PyTorch Conv2d default init
        conv_ws.append(jax.random.uniform(kw, (COUT, cin, K, K), jnp.float32, -bound, bound))
        conv_bs.append(jax.random.uniform(kb, (COUT,), jnp.float32, -bound, bound))
        gammas.append(jnp.ones((COUT,), jnp.float32))    # BatchNorm2d default affine
        betas.append(jnp.zeros((COUT,), jnp.float32))
        cin = COUT

    out = multiple_conv2d_block_forward(x, conv_ws, gammas, betas,
                                        k=K, stride=STRIDE, pad=PAD)
    out = jax.block_until_ready(out)

    ref = _reference(x, conv_ws, conv_bs, gammas, betas, k=K, stride=STRIDE, pad=PAD)
    # Tolerance reflects bf16 MXU operands (with f32 accumulation) through 2 stacked
    # conv+BN+ReLU blocks; the bias-free kernel path is mathematically exact vs the
    # biased reference under training-mode BatchNorm.
    np.testing.assert_allclose(np.asarray(out), np.asarray(ref), rtol=5e-2, atol=5e-2)

    print("KERNEL_OK")
</pallas_src>

<mosaic_0001>
module attributes {stable_mosaic.version = 11 : i64} {
  func.func @_matmul_stats_kernel(%arg0: i32, %arg1: memref<256x128xbf16, #tpu.memory_space<vmem>>, %arg2: memref<128x128xbf16, #tpu.memory_space<vmem>>, %arg3: memref<256x128xf32, #tpu.memory_space<vmem>>, %arg4: memref<1x8x128xf32, #tpu.memory_space<vmem>>) attributes {dimension_semantics = [#tpu.dimension_semantics<parallel>], iteration_bounds = array<i64: 2>, scalar_prefetch = 0 : i64, scratch_operands = 0 : i64, tpu.core_type = #tpu.core_type<tc>, window_params = [{transform_indices = @transform_0, window_bounds = array<i64: 256, 128>}, {pipeline_mode = #tpu.pipeline_mode<synchronous>, transform_indices = @transform_1, window_bounds = array<i64: 128, 128>}, {transform_indices = @transform_2, window_bounds = array<i64: 256, 128>}, {transform_indices = @transform_3, window_bounds = array<i64: 1, 8, 128>}]} {
    %c0 = arith.constant 0 : index
    %c0_0 = arith.constant 0 : index
    %0 = vector.load %arg1[%c0, %c0_0] : memref<256x128xbf16, #tpu.memory_space<vmem>>, vector<256x128xbf16>
    %c0_1 = arith.constant 0 : index
    %c0_2 = arith.constant 0 : index
    %1 = vector.load %arg2[%c0_1, %c0_2] : memref<128x128xbf16, #tpu.memory_space<vmem>>, vector<128x128xbf16>
    %cst = arith.constant dense<0.000000e+00> : vector<256x128xf32>
    %2 = tpu.matmul %0, %1, %cst {dimension_numbers = #tpu.dot_dimension_numbers<[1], [0], [0], [1], [0, 0, 1, 1], [], []>} : vector<256x128xbf16>, vector<128x128xbf16>, vector<256x128xf32> -> vector<256x128xf32>
    %c0_3 = arith.constant 0 : index
    %c0_4 = arith.constant 0 : index
    %3 = vector.load %arg3[%c0_3, %c0_4] : memref<256x128xf32, #tpu.memory_space<vmem>>, vector<256x128xf32>
    tpu.vector_store %arg3[%c0_3, %c0_4], %2 {strides = array<i32>} : memref<256x128xf32, #tpu.memory_space<vmem>>, vector<256x128xf32>,
    %cst_5 = arith.constant 0.000000e+00 : f32
    %4 = vector.broadcast %cst_5 : f32 to vector<1x8x128xf32>
    %c0_6 = arith.constant 0 : index
    %c0_7 = arith.constant 0 : index
    %c0_8 = arith.constant 0 : index
    %5 = vector.load %arg4[%c0_6, %c0_7, %c0_8] : memref<1x8x128xf32, #tpu.memory_space<vmem>>, vector<1x8x128xf32>
    tpu.vector_store %arg4[%c0_6, %c0_7, %c0_8], %4 {strides = array<i32>} : memref<1x8x128xf32, #tpu.memory_space<vmem>>, vector<1x8x128xf32>,
    %cst_9 = arith.constant dense<0.000000e+00> : vector<128xf32>
    %6 = vector.multi_reduction <add>, %2, %cst_9 [0] : vector<256x128xf32> to vector<128xf32>
    %7 = vector.shape_cast %6 : vector<128xf32> to vector<1x128xf32>
    %8 = vector.shape_cast %7 : vector<1x128xf32> to vector<1x1x128xf32>
    %c0_10 = arith.constant 0 : index
    %c0_11 = arith.constant 0 : index
    %c0_12 = arith.constant 0 : index
    %9 = vector.load %arg4[%c0_10, %c0_11, %c0_12] : memref<1x8x128xf32, #tpu.memory_space<vmem>>, vector<1x1x128xf32>
    tpu.vector_store %arg4[%c0_10, %c0_11, %c0_12], %8 {strides = array<i32>} : memref<1x8x128xf32, #tpu.memory_space<vmem>>, vector<1x1x128xf32>,
    %10 = arith.mulf %2, %2 : vector<256x128xf32>
    %cst_13 = arith.constant dense<0.000000e+00> : vector<128xf32>
    %11 = vector.multi_reduction <add>, %10, %cst_13 [0] : vector<256x128xf32> to vector<128xf32>
    %12 = vector.shape_cast %11 : vector<128xf32> to vector<1x128xf32>
    %13 = vector.shape_cast %12 : vector<1x128xf32> to vector<1x1x128xf32>
    %c0_14 = arith.constant 0 : index
    %c1 = arith.constant 1 : index
    %c0_15 = arith.constant 0 : index
    %14 = vector.load %arg4[%c0_14, %c1, %c0_15] : memref<1x8x128xf32, #tpu.memory_space<vmem>>, vector<1x1x128xf32>
    tpu.vector_store %arg4[%c0_14, %c1, %c0_15], %13 {strides = array<i32>} : memref<1x8x128xf32, #tpu.memory_space<vmem>>, vector<1x1x128xf32>,
    return
  }
  func.func @transform_0(%arg0: i32) -> (i32, i32) {
    %c0_i32 = arith.constant 0 : i32
    %c0_i32_0 = arith.constant 0 : i32
    return %arg0, %c0_i32 : i32, i32
  }
  func.func @transform_1(%arg0: i32) -> (i32, i32) {
    %c0_i32 = arith.constant 0 : i32
    %c0_i32_0 = arith.constant 0 : i32
    %c0_i32_1 = arith.constant 0 : i32
    return %c0_i32, %c0_i32_0 : i32, i32
  }
  func.func @transform_2(%arg0: i32) -> (i32, i32) {
    %c0_i32 = arith.constant 0 : i32
    %c0_i32_0 = arith.constant 0 : i32
    return %arg0, %c0_i32 : i32, i32
  }
  func.func @transform_3(%arg0: i32) -> (i32, i32, i32) {
    %c0_i32 = arith.constant 0 : i32
    %c0_i32_0 = arith.constant 0 : i32
    %c0_i32_1 = arith.constant 0 : i32
    return %arg0, %c0_i32, %c0_i32_0 : i32, i32, i32
  }
}

module attributes {stable_mosaic.version = 11 : i64} {
  func.func @_bn_relu_kernel(%arg0: i32, %arg1: memref<256x128xf32, #tpu.memory_space<vmem>>, %arg2: memref<1x128xf32, #tpu.memory_space<vmem>>, %arg3: memref<1x128xf32, #tpu.memory_space<vmem>>, %arg4: memref<256x128xbf16, #tpu.memory_space<vmem>>) attributes {dimension_semantics = [#tpu.dimension_semantics<parallel>], iteration_bounds = array<i64: 2>, scalar_prefetch = 0 : i64, scratch_operands = 0 : i64, tpu.core_type = #tpu.core_type<tc>, window_params = [{transform_indices = @transform_0, window_bounds = array<i64: 256, 128>}, {pipeline_mode = #tpu.pipeline_mode<synchronous>, transform_indices = @transform_1, window_bounds = array<i64: 1, 128>}, {pipeline_mode = #tpu.pipeline_mode<synchronous>, transform_indices = @transform_2, window_bounds = array<i64: 1, 128>}, {transform_indices = @transform_3, window_bounds = array<i64: 256, 128>}]} {
    %c0 = arith.constant 0 : index
    %c0_0 = arith.constant 0 : index
    %0 = vector.load %arg1[%c0, %c0_0] : memref<256x128xf32, #tpu.memory_space<vmem>>, vector<256x128xf32>
    %c0_1 = arith.constant 0 : index
    %c0_2 = arith.constant 0 : index
    %1 = vector.load %arg2[%c0_1, %c0_2] : memref<1x128xf32, #tpu.memory_space<vmem>>, vector<1x128xf32>
    %2 = vector.broadcast %1 : vector<1x128xf32> to vector<256x128xf32>
    %3 = arith.mulf %0, %2 : vector<256x128xf32>
    %c0_3 = arith.constant 0 : index
    %c0_4 = arith.constant 0 : index
    %4 = vector.load %arg3[%c0_3, %c0_4] : memref<1x128xf32, #tpu.memory_space<vmem>>, vector<1x128xf32>
    %5 = vector.broadcast %4 : vector<1x128xf32> to vector<256x128xf32>
    %6 = arith.addf %3, %5 : vector<256x128xf32>
    %cst = arith.constant 0.000000e+00 : f32
    %7 = vector.broadcast %cst : f32 to vector<256x128xf32>
    %8 = arith.maximumf %6, %7 : vector<256x128xf32>
    %9 = arith.truncf %8 : vector<256x128xf32> to vector<256x128xbf16>
    %c0_5 = arith.constant 0 : index
    %c0_6 = arith.constant 0 : index
    %10 = vector.load %arg4[%c0_5, %c0_6] : memref<256x128xbf16, #tpu.memory_space<vmem>>, vector<256x128xbf16>
    tpu.vector_store %arg4[%c0_5, %c0_6], %9 {strides = array<i32>} : memref<256x128xbf16, #tpu.memory_space<vmem>>, vector<256x128xbf16>,
    return
  }
  func.func @transform_0(%arg0: i32) -> (i32, i32) {
    %c0_i32 = arith.constant 0 : i32
    %c0_i32_0 = arith.constant 0 : i32
    return %arg0, %c0_i32 : i32, i32
  }
  func.func @transform_1(%arg0: i32) -> (i32, i32) {
    %c0_i32 = arith.constant 0 : i32
    %c0_i32_0 = arith.constant 0 : i32
    %c0_i32_1 = arith.constant 0 : i32
    return %c0_i32, %c0_i32_0 : i32, i32
  }
  func.func @transform_2(%arg0: i32) -> (i32, i32) {
    %c0_i32 = arith.constant 0 : i32
    %c0_i32_0 = arith.constant 0 : i32
    %c0_i32_1 = arith.constant 0 : i32
    return %c0_i32, %c0_i32_0 : i32, i32
  }
  func.func @transform_3(%arg0: i32) -> (i32, i32) {
    %c0_i32 = arith.constant 0 : i32
    %c0_i32_0 = arith.constant 0 : i32
    return %arg0, %c0_i32 : i32, i32
  }
}

module attributes {stable_mosaic.version = 11 : i64} {
  func.func @_bn_relu_kernel(%arg0: i32, %arg1: memref<256x128xf32, #tpu.memory_space<vmem>>, %arg2: memref<1x128xf32, #tpu.memory_space<vmem>>, %arg3: memref<1x128xf32, #tpu.memory_space<vmem>>, %arg4: memref<256x128xf32, #tpu.memory_space<vmem>>) attributes {dimension_semantics = [#tpu.dimension_semantics<parallel>], iteration_bounds = array<i64: 2>, scalar_prefetch = 0 : i64, scratch_operands = 0 : i64, tpu.core_type = #tpu.core_type<tc>, window_params = [{transform_indices = @transform_0, window_bounds = array<i64: 256, 128>}, {pipeline_mode = #tpu.pipeline_mode<synchronous>, transform_indices = @transform_1, window_bounds = array<i64: 1, 128>}, {pipeline_mode = #tpu.pipeline_mode<synchronous>, transform_indices = @transform_2, window_bounds = array<i64: 1, 128>}, {transform_indices = @transform_3, window_bounds = array<i64: 256, 128>}]} {
    %c0 = arith.constant 0 : index
    %c0_0 = arith.constant 0 : index
    %0 = vector.load %arg1[%c0, %c0_0] : memref<256x128xf32, #tpu.memory_space<vmem>>, vector<256x128xf32>
    %c0_1 = arith.constant 0 : index
    %c0_2 = arith.constant 0 : index
    %1 = vector.load %arg2[%c0_1, %c0_2] : memref<1x128xf32, #tpu.memory_space<vmem>>, vector<1x128xf32>
    %2 = vector.broadcast %1 : vector<1x128xf32> to vector<256x128xf32>
    %3 = arith.mulf %0, %2 : vector<256x128xf32>
    %c0_3 = arith.constant 0 : index
    %c0_4 = arith.constant 0 : index
    %4 = vector.load %arg3[%c0_3, %c0_4] : memref<1x128xf32, #tpu.memory_space<vmem>>, vector<1x128xf32>
    %5 = vector.broadcast %4 : vector<1x128xf32> to vector<256x128xf32>
    %6 = arith.addf %3, %5 : vector<256x128xf32>
    %cst = arith.constant 0.000000e+00 : f32
    %7 = vector.broadcast %cst : f32 to vector<256x128xf32>
    %8 = arith.maximumf %6, %7 : vector<256x128xf32>
    %c0_5 = arith.constant 0 : index
    %c0_6 = arith.constant 0 : index
    %9 = vector.load %arg4[%c0_5, %c0_6] : memref<256x128xf32, #tpu.memory_space<vmem>>, vector<256x128xf32>
    tpu.vector_store %arg4[%c0_5, %c0_6], %8 {strides = array<i32>} : memref<256x128xf32, #tpu.memory_space<vmem>>, vector<256x128xf32>,
    return
  }
  func.func @transform_0(%arg0: i32) -> (i32, i32) {
    %c0_i32 = arith.constant 0 : i32
    %c0_i32_0 = arith.constant 0 : i32
    return %arg0, %c0_i32 : i32, i32
  }
  func.func @transform_1(%arg0: i32) -> (i32, i32) {
    %c0_i32 = arith.constant 0 : i32
    %c0_i32_0 = arith.constant 0 : i32
    %c0_i32_1 = arith.constant 0 : i32
    return %c0_i32, %c0_i32_0 : i32, i32
  }
  func.func @transform_2(%arg0: i32) -> (i32, i32) {
    %c0_i32 = arith.constant 0 : i32
    %c0_i32_0 = arith.constant 0 : i32
    %c0_i32_1 = arith.constant 0 : i32
    return %c0_i32, %c0_i32_0 : i32, i32
  }
  func.func @transform_3(%arg0: i32) -> (i32, i32) {
    %c0_i32 = arith.constant 0 : i32
    %c0_i32_0 = arith.constant 0 : i32
    return %arg0, %c0_i32 : i32, i32
  }
}

</mosaic_0001>

<bundles_post_ra>
// kernel: multiple_conv2d_block_forward.5
= control target key start
LH: loop header
LB: loop body
LE: loop exit
PB: predicated region body
PF: predicated region fallthrough
CT: control target
= control target key end

     0   :  { %s740_s12 = smov 0   ;;  %s887_s0 = inlined_call_operand.vmem [shape: f32[512,128], index: 0, kind: input, shape index: {}]   ;;  %s888_s1 = inlined_call_operand.vmem [shape: f32[1,128], index: 1, kind: input, shape index: {}]   ;;  %s889_s2 = inlined_call_operand.vmem [shape: f32[1,128], index: 2, kind: input, shape index: {}]   ;;  %s890_s3 = inlined_call_operand.vmem [shape: bf16[512,128], index: 3, kind: output, shape index: {}]  }
   0x1 LB: > { %s532_s13 = sadd.s32 4294967295, %s718_s12   ;;  %p536_p0 = scmp.ge.s32.totalorder %s718_s12, 1  ;;  %s718_s12 = sphi %s740_s12, %s13_s12  }
   0x2   : > { %p138_p1 = scmp.lt.s32.totalorder %s718_s12, 3 }
   0x4   : > { %p139_p2 = pnand %p536_p0, %p138_p1 }
   0x5   : > { %s537_s14 = sshll.u32 (!%p139_p2), %s532_s13, 5  ;;  %v754_v0 = vld [vmem:[%s888_s1] ss:$0 sm:$0xff] (!%p139_p2) }
   0x6   : > { %142 = sbr.rel (%p139_p2) target bundleno = 51 (0x33), region = 32  ;;  %p163_p3 = scmp.lt.s32.totalorder (!%p139_p2), %s537_s14, 63  ;;  %v764_v1 = vld [vmem:[%s889_s2] ss:$0 sm:$0xff] (!%p139_p2) }
   0xd   : > { %s892_s14 = smov (!%p163_p3, %s537_s14), 63 }
   0xe   : > { %s538_s15 = sshll.u32 %s892_s14, 3  ;;  %s540_s23 = sshll.u32 %s892_s14, 2 }
   0xf   : > { %s759_s20 = scalar_lea.vmem %s887_s0, %s538_s15  ;;  %s796_s26 = scalar_lea.vmem %s890_s3, %s540_s23 }
  0x10   : > { %v174_v2 = vld [vmem:[%s759_s20] sm:$0xff]  ;;  %v175_v3 = vld [vmem:[%s759_s20 + $0x8] sm:$0xff]  ;;  %v176_v4 = vld [vmem:[%s759_s20 + $0x10] sm:$0xff] }
  0x11   : > { %v213_v5 = vmul.f32 %v754_v0, %v174_v2  ;;  %v214_v6 = vmul.f32 %v754_v0, %v175_v3  ;;  %v177_v7 = vld [vmem:[%s759_s20 + $0x18] sm:$0xff]  ;;  %v215_v8 = vmul.f32 %v754_v0, %v176_v4  ;;  %v178_v9 = vld [vmem:[%s759_s20 + $0x20] sm:$0xff]  ;;  %v179_v10 = vld [vmem:[%s759_s20 + $0x28] sm:$0xff] }
  0x12   : > { %v216_v11 = vmul.f32 %v754_v0, %v177_v7  ;;  %v217_v12 = vmul.f32 %v754_v0, %v178_v9  ;;  %v218_v13 = vmul.f32 %v754_v0, %v179_v10  ;;  %v180_v14 = vld [vmem:[%s759_s20 + $0x30] sm:$0xff]  ;;  %v181_v15 = vld [vmem:[%s759_s20 + $0x38] sm:$0xff]  ;;  %v182_v24 = vld [vmem:[%s759_s20 + $0x40] sm:$0xff] }
  0x13   : > { %v252_v16 = vadd.f32 %v764_v1, %v213_v5  ;;  %v253_v17 = vadd.f32 %v764_v1, %v214_v6  ;;  %v254_v18 = vadd.f32 %v764_v1, %v215_v8  ;;  %v219_v19 = vmul.f32 %v754_v0, %v180_v14  ;;  %v183_v25 = vld [vmem:[%s759_s20 + $0x48] sm:$0xff]  ;;  %v184_v30 = vld [vmem:[%s759_s20 + $0x50] sm:$0xff]  ;;  %v185_v35 = vld [vmem:[%s759_s20 + $0x58] sm:$0xff] }
  0x14   : > { %v255_v20 = vadd.f32 %v764_v1, %v216_v11  ;;  %v256_v21 = vadd.f32 %v764_v1, %v217_v12  ;;  %v257_v22 = vadd.f32 %v764_v1, %v218_v13  ;;  %v220_v23 = vmul.f32 %v754_v0, %v181_v15  ;;  %v186_v36 = vld [vmem:[%s759_s20 + $0x60] sm:$0xff]  ;;  %v187_v41 = vld [vmem:[%s759_s20 + $0x68] sm:$0xff]  ;;  %v188_v42 = vld [vmem:[%s759_s20 + $0x70] sm:$0xff] }
  0x15   : > { %v284_v26 = vmax.f32 %v252_v16, 0.0  ;;  %v285_v27 = vmax.f32 %v253_v17, 0.0  ;;  %v286_v28 = vmax.f32 %v254_v18, 0.0  ;;  %v258_v29 = vadd.f32 %v764_v1, %v219_v19  ;;  %v189_v51 = vld [vmem:[%s759_s20 + $0x78] sm:$0xff]  ;;  %v190_v56 = vld [vmem:[%s759_s20 + $0x80] sm:$0xff]  ;;  %v191_v61 = vld [vmem:[%s759_s20 + $0x88] sm:$0xff] }
  0x16   : > { %v287_v31 = vmax.f32 %v255_v20, 0.0  ;;  %v288_v32 = vmax.f32 %v256_v21, 0.0  ;;  %v289_v33 = vmax.f32 %v257_v22, 0.0  ;;  %v259_v34 = vadd.f32 %v764_v1, %v220_v23  ;;  %v192_v4 = vld [vmem:[%s759_s20 + $0x90] sm:$0xff]  ;;  %v193_v5 = vld [vmem:[%s759_s20 + $0x98] sm:$0xff]  ;;  %v194_v10 = vld [vmem:[%s759_s20 + $0xa0] sm:$0xff] }
  0x17   : > { %v612_v37 = vpack.c.bf16 %v285_v27, %v284_v26  ;;  %v290_v38 = vmax.f32 %v258_v29, 0.0  ;;  %v221_v39 = vmul.f32 %v754_v0, %v182_v24  ;;  %v222_v40 = vmul.f32 %v754_v0, %v183_v25  ;;  %v195_v15 = vld [vmem:[%s759_s20 + $0xa8] sm:$0xff]  ;;  %v196_v20 = vld [vmem:[%s759_s20 + $0xb0] sm:$0xff]  ;;  %v197_v25 = vld [vmem:[%s759_s20 + $0xb8] sm:$0xff] }
  0x18   : > { %v617_v43 = vpack.c.bf16 %v287_v31, %v286_v28  ;;  %v622_v44 = vpack.c.bf16 %v289_v33, %v288_v32  ;;  %v291_v45 = vmax.f32 %v259_v34, 0.0  ;;  %v223_v46 = vmul.f32 %v754_v0, %v184_v30  ;;  %v198_v30 = vld [vmem:[%s759_s20 + $0xc0] sm:$0xff] }
  0x19   : > { %613 = vst [vmem:[%s796_s26] sm:$0xff] %v612_v37   ;;  %v260_v47 = vadd.f32 %v764_v1, %v221_v39  ;;  %v261_v48 = vadd.f32 %v764_v1, %v222_v40  ;;  %v224_v49 = vmul.f32 %v754_v0, %v185_v35  ;;  %v225_v50 = vmul.f32 %v754_v0, %v186_v36  ;;  %v199_v35 = vld [vmem:[%s759_s20 + $0xc8] sm:$0xff]  ;;  %v200_v40 = vld [vmem:[%s759_s20 + $0xd0] sm:$0xff] }
  0x1a   : > { %689 = vst [vmem:[%s796_s26 + $0x8] sm:$0xff] %v617_v43   ;;  %690 = vst [vmem:[%s796_s26 + $0x10] sm:$0xff] %v622_v44   ;;  %v627_v52 = vpack.c.bf16 %v291_v45, %v290_v38  ;;  %v262_v53 = vadd.f32 %v764_v1, %v223_v46  ;;  %v226_v54 = vmul.f32 %v754_v0, %v187_v41  ;;  %v201_v41 = vld [vmem:[%s759_s20 + $0xd8] sm:$0xff]  ;;  %v202_v46 = vld [vmem:[%s759_s20 + $0xe0] sm:$0xff] }
  0x1b   : > { %v227_v55 = vmul.f32 %v754_v0, %v188_v42  ;;  %v292_v57 = vmax.f32 %v260_v47, 0.0  ;;  %v293_v58 = vmax.f32 %v261_v48, 0.0  ;;  %v263_v59 = vadd.f32 %v764_v1, %v224_v49 }
  0x1c   : > { %v264_v60 = vadd.f32 %v764_v1, %v225_v50  ;;  %691 = vst [vmem:[%s796_s26 + $0x18] sm:$0xff] %v627_v52   ;;  %v294_v62 = vmax.f32 %v262_v53, 0.0  ;;  %v265_v63 = vadd.f32 %v764_v1, %v226_v54  ;;  %v228_v2 = vmul.f32 %v754_v0, %v189_v51  ;;  %v203_v51 = vld [vmem:[%s759_s20 + $0xe8] sm:$0xff] }
  0x1d   : > { %v266_v3 = vadd.f32 %v764_v1, %v227_v55  ;;  %v632_v6 = vpack.c.bf16 %v293_v58, %v292_v57  ;;  %v295_v7 = vmax.f32 %v263_v59, 0.0  ;;  %v229_v9 = vmul.f32 %v754_v0, %v190_v56  ;;  %v204_v56 = vld [vmem:[%s759_s20 + $0xf0] sm:$0xff] }
  0x1e   : > { %v296_v8 = vmax.f32 %v264_v60, 0.0  ;;  %v297_v11 = vmax.f32 %v265_v63, 0.0  ;;  %v267_v12 = vadd.f32 %v764_v1, %v228_v2  ;;  %v230_v14 = vmul.f32 %v754_v0, %v191_v61  ;;  %v205_v61 = vld [vmem:[%s759_s20 + $0xf8] sm:$0xff] }
  0x1f   : > { %v298_v13 = vmax.f32 %v266_v3, 0.0  ;;  %692 = vst [vmem:[%s796_s26 + $0x20] sm:$0xff] %v632_v6   ;;  %v637_v16 = vpack.c.bf16 %v295_v7, %v294_v62  ;;  %v268_v17 = vadd.f32 %v764_v1, %v229_v9  ;;  %v231_v18 = vmul.f32 %v754_v0, %v192_v4 }
  0x20   : > { %v232_v19 = vmul.f32 %v754_v0, %v193_v5  ;;  %v642_v21 = vpack.c.bf16 %v297_v11, %v296_v8  ;;  %v299_v22 = vmax.f32 %v267_v12, 0.0  ;;  %v269_v23 = vadd.f32 %v764_v1, %v230_v14 }
  0x21   : > { %v233_v24 = vmul.f32 %v754_v0, %v194_v10  ;;  %693 = vst [vmem:[%s796_s26 + $0x28] sm:$0xff] %v637_v16   ;;  %v300_v26 = vmax.f32 %v268_v17, 0.0  ;;  %v270_v27 = vadd.f32 %v764_v1, %v231_v18  ;;  %v234_v29 = vmul.f32 %v754_v0, %v195_v15 }
  0x22   : > { %v271_v28 = vadd.f32 %v764_v1, %v232_v19  ;;  %694 = vst [vmem:[%s796_s26 + $0x30] sm:$0xff] %v642_v21   ;;  %v647_v31 = vpack.c.bf16 %v299_v22, %v298_v13  ;;  %v301_v32 = vmax.f32 %v269_v23, 0.0  ;;  %v235_v34 = vmul.f32 %v754_v0, %v196_v20 }
  0x23   : > { %v272_v33 = vadd.f32 %v764_v1, %v233_v24  ;;  %v302_v36 = vmax.f32 %v270_v27, 0.0  ;;  %v273_v38 = vadd.f32 %v764_v1, %v234_v29  ;;  %v236_v39 = vmul.f32 %v754_v0, %v197_v25 }
  0x24   : > { %v303_v37 = vmax.f32 %v271_v28, 0.0  ;;  %695 = vst [vmem:[%s796_s26 + $0x38] sm:$0xff] %v647_v31   ;;  %v652_v42 = vpack.c.bf16 %v301_v32, %v300_v26  ;;  %v274_v44 = vadd.f32 %v764_v1, %v235_v34  ;;  %v237_v45 = vmul.f32 %v754_v0, %v198_v30 }
  0x25   : > { %v304_v43 = vmax.f32 %v272_v33, 0.0  ;;  %v305_v48 = vmax.f32 %v273_v38, 0.0  ;;  %v275_v49 = vadd.f32 %v764_v1, %v236_v39  ;;  %v238_v50 = vmul.f32 %v754_v0, %v199_v35 }
  0x26   : > { %v657_v47 = vpack.c.bf16 %v303_v37, %v302_v36  ;;  %696 = vst [vmem:[%s796_s26 + $0x40] sm:$0xff] %v652_v42   ;;  %v306_v52 = vmax.f32 %v274_v44, 0.0  ;;  %v276_v53 = vadd.f32 %v764_v1, %v237_v45  ;;  %v239_v54 = vmul.f32 %v754_v0, %v200_v40 }
  0x27   : > { %v240_v55 = vmul.f32 %v754_v0, %v201_v41  ;;  %v662_v57 = vpack.c.bf16 %v305_v48, %v304_v43  ;;  %v307_v58 = vmax.f32 %v275_v49, 0.0  ;;  %v277_v59 = vadd.f32 %v764_v1, %v238_v50 }
  0x28   : > { %697 = vst [vmem:[%s796_s26 + $0x48] sm:$0xff] %v657_v47   ;;  %v241_v60 = vmul.f32 %v754_v0, %v202_v46  ;;  %v308_v62 = vmax.f32 %v276_v53, 0.0  ;;  %v278_v63 = vadd.f32 %v764_v1, %v239_v54  ;;  %v242_v3 = vmul.f32 %v754_v0, %v203_v51 }
  0x29   : > { %v279_v2 = vadd.f32 %v764_v1, %v240_v55  ;;  %698 = vst [vmem:[%s796_s26 + $0x50] sm:$0xff] %v662_v57   ;;  %v667_v4 = vpack.c.bf16 %v307_v58, %v306_v52  ;;  %v309_v5 = vmax.f32 %v277_v59, 0.0  ;;  %v243_v7 = vmul.f32 %v754_v0, %v204_v56 }
  0x2a   : > { %v280_v6 = vadd.f32 %v764_v1, %v241_v60  ;;  %v310_v8 = vmax.f32 %v278_v63, 0.0  ;;  %v281_v10 = vadd.f32 %v764_v1, %v242_v3  ;;  %v244_v11 = vmul.f32 %v754_v0, %v205_v61 }
  0x2b   : > { %v311_v9 = vmax.f32 %v279_v2, 0.0  ;;  %699 = vst [vmem:[%s796_s26 + $0x58] sm:$0xff] %v667_v4   ;;  %v672_v12 = vpack.c.bf16 %v309_v5, %v308_v62  ;;  %v282_v14 = vadd.f32 %v764_v1, %v243_v7 }
  0x2c   : > { %v312_v13 = vmax.f32 %v280_v6, 0.0  ;;  %v313_v16 = vmax.f32 %v281_v10, 0.0  ;;  %v283_v17 = vadd.f32 %v764_v1, %v244_v11 }
  0x2d   : > { %v677_v15 = vpack.c.bf16 %v311_v9, %v310_v8  ;;  %700 = vst [vmem:[%s796_s26 + $0x60] sm:$0xff] %v672_v12   ;;  %v314_v18 = vmax.f32 %v282_v14, 0.0 }
  0x2e   : > { %v682_v19 = vpack.c.bf16 %v313_v16, %v312_v13  ;;  %v315_v20 = vmax.f32 %v283_v17, 0.0 }
  0x2f   : > { %701 = vst [vmem:[%s796_s26 + $0x68] sm:$0xff] %v677_v15  }
  0x30   : > { %702 = vst [vmem:[%s796_s26 + $0x70] sm:$0xff] %v682_v19   ;;  %v687_v21 = vpack.c.bf16 %v315_v20, %v314_v18 }
  0x32   : > { %703 = vst [vmem:[%s796_s26 + $0x78] sm:$0xff] %v687_v21  }
  0x33 PF: > { %s13_s12 = sadd.s32 1, %s718_s12  }
  0x34   : > { %p10_p4 = scmp.ge.s32.totalorder %s13_s12, 4  }
  0x36   :  { %12 = sbr.rel (!%p10_p4) target bundleno = 1 (0x1), region = 62 }

// kernel: multiple_conv2d_block_forward.4
= control target key start
LH: loop header
LB: loop body
LE: loop exit
PB: predicated region body
PF: predicated region fallthrough
CT: control target
= control target key end

     0   :  { %s953_s12 = smov 0   ;;  %s1141_s0 = inlined_call_operand.vmem [shape: bf16[512,128], index: 0, kind: input, shape index: {}]   ;;  %s1142_s1 = inlined_call_operand.vmem [shape: bf16[128,128], index: 1, kind: input, shape index: {}]   ;;  %s1143_s2 = inlined_call_operand.vmem [shape: f32[512,128], index: 2, kind: output, shape index: {0}]   ;;  %s1144_s3 = inlined_call_operand.vmem [shape: f32[2,8,128], index: 3, kind: output, shape index: {1}]  }
   0x1 LB: > { %s959_s13 = sadd.s32 4294967295, %s930_s12   ;;  %p771_p0 = scmp.ge.s32.totalorder %s930_s12, 1  ;;  %s930_s12 = sphi %s953_s12, %s14_s12  }
   0x2   : > { %p141_p1 = scmp.lt.s32.totalorder %s930_s12, 3 }
   0x4   : > { %p142_p2 = pnand %p771_p0, %p141_p1 }
   0x5   : > { %v900_v0 = vld [vmem:[%s1142_s1] sm:$0xff] (!%p142_p2)   ;;  %s772_s16 = sshll.u32 (!%p142_p2), %s959_s13, 5  ;;  %v901_v1 = vld [vmem:[%s1142_s1 + $0x8] sm:$0xff] (!%p142_p2)   ;;  %v902_v2 = vld [vmem:[%s1142_s1 + $0x10] sm:$0xff] (!%p142_p2)   ;;  %p181_p4 = scmp.lt.s32.totalorder (!%p142_p2), %s959_s13, 1  ;;  %v932_v24 = vmov (!%p142_p2), 0.0  }
   0x6   : > { %145 = sbr.rel (%p142_p2) target bundleno = 330 (0x14a), region = 28  ;;  %p170_p3 = scmp.lt.s32.totalorder (!%p142_p2), %s772_s16, 63  ;;  %827 = vmatprep.subr.bf16.mxu0 (!%p142_p2), %v900_v0  ;;  %875 = vmatprep.subr.bf16.mxu1 (!%p142_p2), %v900_v0  ;;  %v903_v3 = vld [vmem:[%s1142_s1 + $0x18] sm:$0xff] (!%p142_p2)   ;;  %v904_v5 = vld [vmem:[%s1142_s1 + $0x20] sm:$0xff] (!%p142_p2)   ;;  %v905_v6 = vld [vmem:[%s1142_s1 + $0x28] sm:$0xff] (!%p142_p2)  }
   0x7   : > { %828 = vmatpush3.bf16.msra.mxu0 (!%p142_p2), %v900_v0  ;;  %883 = vmatpush3.bf16.msra.mxu1 (!%p142_p2), %v900_v0  ;;  %v906_v8 = vld [vmem:[%s1142_s1 + $0x30] sm:$0xff] (!%p142_p2)   ;;  %v907_v9 = vld [vmem:[%s1142_s1 + $0x38] sm:$0xff] (!%p142_p2)  }
   0x8   : > { %829 = vmatprep.subr.bf16.mxu0 (!%p142_p2), %v901_v1  ;;  %876 = vmatprep.subr.bf16.mxu1 (!%p142_p2), %v901_v1 }
   0xb   : > { %830 = vmatpush3.bf16.msra.mxu0 (!%p142_p2), %v901_v1  ;;  %884 = vmatpush3.bf16.msra.mxu1 (!%p142_p2), %v901_v1 }
   0xc   : > { %831 = vmatprep.subr.bf16.mxu0 (!%p142_p2), %v902_v2  ;;  %877 = vmatprep.subr.bf16.mxu1 (!%p142_p2), %v902_v2 }
   0xd   : > { %s1146_s16 = smov (!%p170_p3, %s772_s16), 63  ;;  %s1148_s13 = smov (!%p181_p4, %s959_s13), 1 }
   0xe   : > { %s773_s21 = sshll.u32 %s1146_s16, 2  ;;  %s776_s8 = sshll.u32 %s1148_s13, 3 }
   0xf   : > { %s979_s24 = scalar_lea.vmem %s1141_s0, %s773_s21  ;;  %832 = vmatpush3.bf16.msra.mxu0 %v902_v2  ;;  %885 = vmatpush3.bf16.msra.mxu1 %v902_v2  ;;  %s1017_s11 = scalar_lea.vmem %s1144_s3, %s776_s8 }
  0x10   : > { %v908_v4 = vld [vmem:[%s979_s24] sm:$0xff]   ;;  %833 = vmatprep.subr.bf16.mxu0 %v903_v3  ;;  %878 = vmatprep.subr.bf16.mxu1 %v903_v3  ;;  %v909_v10 = vld [vmem:[%s979_s24 + $0x8] sm:$0xff]   ;;  %v910_v12 = vld [vmem:[%s979_s24 + $0x10] sm:$0xff]   ;;  %571 = vst [vmem:[%s1017_s11] sm:$0xff] %v932_v24  ;;  %s775_s14 = sshll.u32 %s1146_s16, 3 }
  0x11   : > { %843 = vmatprep.mubr.bf16.mxu0 %v908_v4  ;;  %v916_v7 = vld [vmem:[%s979_s24 + $0x40] sm:$0xff]   ;;  %v917_v11 = vld [vmem:[%s979_s24 + $0x48] sm:$0xff]   ;;  %v918_v13 = vld [vmem:[%s979_s24 + $0x50] sm:$0xff]   ;;  %s1024_s18 = scalar_lea.vmem %s1143_s2, %s775_s14 }
  0x12   : > { %859 = vmatprep.mubr.bf16.mxu1 %v916_v7  ;;  %v911_v14 = vld [vmem:[%s979_s24 + $0x18] sm:$0xff]   ;;  %v912_v16 = vld [vmem:[%s979_s24 + $0x20] sm:$0xff]   ;;  %v913_v18 = vld [vmem:[%s979_s24 + $0x28] sm:$0xff]  }
  0x13   : > { %834 = vmatpush3.bf16.msra.mxu0 %v903_v3  ;;  %886 = vmatpush3.bf16.msra.mxu1 %v903_v3  ;;  %v919_v15 = vld [vmem:[%s979_s24 + $0x58] sm:$0xff]   ;;  %v920_v17 = vld [vmem:[%s979_s24 + $0x60] sm:$0xff]   ;;  %v921_v19 = vld [vmem:[%s979_s24 + $0x68] sm:$0xff]  }
  0x14   : > { %835 = vmatprep.subr.bf16.mxu0 %v904_v5  ;;  %879 = vmatprep.subr.bf16.mxu1 %v904_v5  ;;  %v914_v20 = vld [vmem:[%s979_s24 + $0x30] sm:$0xff]   ;;  %v915_v22 = vld [vmem:[%s979_s24 + $0x38] sm:$0xff]  }
  0x15   : > { %v922_v21 = vld [vmem:[%s979_s24 + $0x70] sm:$0xff]   ;;  %v923_v23 = vld [vmem:[%s979_s24 + $0x78] sm:$0xff]  }
  0x17   : > { %836 = vmatpush3.bf16.msra.mxu0 %v904_v5  ;;  %887 = vmatpush3.bf16.msra.mxu1 %v904_v5 }
  0x18   : > { %837 = vmatprep.subr.bf16.mxu0 %v905_v6  ;;  %880 = vmatprep.subr.bf16.mxu1 %v905_v6 }
  0x1b   : > { %838 = vmatpush3.bf16.msra.mxu0 %v905_v6  ;;  %888 = vmatpush3.bf16.msra.mxu1 %v905_v6 }
  0x1c   : > { %839 = vmatprep.subr.bf16.mxu0 %v906_v8  ;;  %881 = vmatprep.subr.bf16.mxu1 %v906_v8 }
  0x1f   : > { %840 = vmatpush3.bf16.msra.mxu0 %v906_v8  ;;  %889 = vmatpush3.bf16.msra.mxu1 %v906_v8 }
  0x20   : > { %841 = vmatprep.subr.bf16.mxu0 %v907_v9  ;;  %882 = vmatprep.subr.bf16.mxu1 %v907_v9 }
  0x23   : > { %842 = vmatpush3.bf16.msra.mxu0 %v907_v9  ;;  %890 = vmatpush3.bf16.msra.mxu1 %v907_v9 }
  0x26   : > { %844 = vmatmul.mubr.bf16.vlgmr.msra.gmra.mrb[0].mxu0 %v909_v10  ;;  %860 = vmatmul.mubr.bf16.vlgmr.msra.gmra.mrb[0].mxu1 %v917_v11 }
  0x27   : > { %847 = vmatprep.mubr.bf16.mxu0 %v910_v12  ;;  %863 = vmatprep.mubr.bf16.mxu1 %v918_v13 }
  0x2e   : > { %848 = vmatmul.mubr.bf16.gmra.mrb[4].mxu0 %v911_v14  ;;  %864 = vmatmul.mubr.bf16.gmra.mrb[4].mxu1 %v919_v15 }
  0x2f   : > { %851 = vmatprep.mubr.bf16.mxu0 %v912_v16  ;;  %867 = vmatprep.mubr.bf16.mxu1 %v920_v17 }
  0x36   : > { %852 = vmatmul.mubr.bf16.gmra.mrb[8].mxu0 %v913_v18  ;;  %868 = vmatmul.mubr.bf16.gmra.mrb[8].mxu1 %v921_v19 }
  0x37   : > { %855 = vmatprep.mubr.bf16.mxu0 %v914_v20  ;;  %871 = vmatprep.mubr.bf16.mxu1 %v922_v21 }
  0x3e   : > { %856 = vmatmul.mubr.bf16.gmra.mrb[12].mxu0 %v915_v22  ;;  %872 = vmatmul.mubr.bf16.gmra.mrb[12].mxu1 %v923_v23 }
  0xf9   : > { %v845_v25 = vpop.f32.mrb[0].mxu0  ;;  %v1026_v26 = vpop.f32.mrb[0].mxu1 }
  0xfa   : > { %541 = vst [vmem:[%s1024_s18 + $0x10] sm:$0xff] %v845_v25  ;;  %v412_v27 = vpop.f32.mrb[1].mxu0  ;;  %557 = vst [vmem:[%s1024_s18 + $0x90] sm:$0xff] %v1026_v26  ;;  %v1031_v28 = vpop.f32.mrb[1].mxu1  ;;  %v612_v36 = vmul.f32 %v845_v25, %v845_v25 }
  0xfb   : > { %539 = vst [vmem:[%s1024_s18] sm:$0xff] %v412_v27  ;;  %v846_v29 = vpop.f32.mrb[2].mxu0  ;;  %555 = vst [vmem:[%s1024_s18 + $0x80] sm:$0xff] %v1031_v28  ;;  %v1036_v30 = vpop.f32.mrb[2].mxu1  ;;  %v610_v33 = vmul.f32 %v412_v27, %v412_v27 }
  0xfc   : > { %542 = vst [vmem:[%s1024_s18 + $0x18] sm:$0xff] %v846_v29  ;;  %v415_v31 = vpop.f32.mrb[3].mxu0  ;;  %558 = vst [vmem:[%s1024_s18 + $0x98] sm:$0xff] %v1036_v30  ;;  %v1041_v32 = vpop.f32.mrb[3].mxu1  ;;  %v613_v39 = vmul.f32 %v846_v29, %v846_v29 }
  0xfd   : > { %540 = vst [vmem:[%s1024_s18 + $0x8] sm:$0xff] %v415_v31  ;;  %v572_v34 = vadd.f32 %v415_v31, %v412_v27  ;;  %v611_v35 = vmul.f32 %v415_v31, %v415_v31  ;;  %556 = vst [vmem:[%s1024_s18 + $0x88] sm:$0xff] %v1041_v32 }
  0xff   : > { %v573_v37 = vadd.f32 %v845_v25, %v572_v34  ;;  %v642_v38 = vadd.f32 %v611_v35, %v610_v33 }
 0x101   : > { %v643_v40 = vadd.f32 %v642_v38, %v612_v36  ;;  %v849_v41 = vpop.f32.mrb[4].mxu0  ;;  %v574_v42 = vadd.f32 %v846_v29, %v573_v37  ;;  %v1046_v43 = vpop.f32.mrb[4].mxu1 }
 0x102   : > { %545 = vst [vmem:[%s1024_s18 + $0x30] sm:$0xff] %v849_v41  ;;  %v428_v44 = vpop.f32.mrb[5].mxu0  ;;  %561 = vst [vmem:[%s1024_s18 + $0xb0] sm:$0xff] %v1046_v43  ;;  %v1051_v45 = vpop.f32.mrb[5].mxu1  ;;  %v616_v56 = vmul.f32 %v849_v41, %v849_v41 }
 0x103   : > { %543 = vst [vmem:[%s1024_s18 + $0x20] sm:$0xff] %v428_v44  ;;  %v575_v46 = vadd.f32 %v574_v42, %v428_v44  ;;  %v614_v47 = vmul.f32 %v428_v44, %v428_v44  ;;  %v644_v48 = vadd.f32 %v643_v40, %v613_v39  ;;  %v850_v49 = vpop.f32.mrb[6].mxu0  ;;  %559 = vst [vmem:[%s1024_s18 + $0xa0] sm:$0xff] %v1051_v45  ;;  %v1056_v50 = vpop.f32.mrb[6].mxu1 }
 0x104   : > { %546 = vst [vmem:[%s1024_s18 + $0x38] sm:$0xff] %v850_v49  ;;  %v431_v51 = vpop.f32.mrb[7].mxu0  ;;  %562 = vst [vmem:[%s1024_s18 + $0xb8] sm:$0xff] %v1056_v50  ;;  %v1061_v52 = vpop.f32.mrb[7].mxu1  ;;  %v617_v59 = vmul.f32 %v850_v49, %v850_v49  ;;  %v626_v42 = vmul.f32 %v1031_v28, %v1031_v28 }
 0x105   : > { %v645_v53 = vadd.f32 %v644_v48, %v614_v47  ;;  %544 = vst [vmem:[%s1024_s18 + $0x28] sm:$0xff] %v431_v51  ;;  %v576_v54 = vadd.f32 %v575_v46, %v431_v51  ;;  %v615_v55 = vmul.f32 %v431_v51, %v431_v51  ;;  %560 = vst [vmem:[%s1024_s18 + $0xa8] sm:$0xff] %v1061_v52 }
 0x106   : > { %v628_v51 = vmul.f32 %v1026_v26, %v1026_v26 }
 0x107   : > { %v577_v57 = vadd.f32 %v849_v41, %v576_v54  ;;  %v646_v58 = vadd.f32 %v645_v53, %v615_v55  ;;  %v629_v55 = vmul.f32 %v1036_v30, %v1036_v30 }
 0x109   : > { %v647_v60 = vadd.f32 %v646_v58, %v616_v56  ;;  %v853_v61 = vpop.f32.mrb[8].mxu0  ;;  %v578_v62 = vadd.f32 %v850_v49, %v577_v57  ;;  %v1066_v63 = vpop.f32.mrb[8].mxu1  ;;  %v627_v49 = vmul.f32 %v1041_v32, %v1041_v32 }
 0x10a   : > { %549 = vst [vmem:[%s1024_s18 + $0x50] sm:$0xff] %v853_v61  ;;  %v444_v0 = vpop.f32.mrb[9].mxu0  ;;  %565 = vst [vmem:[%s1024_s18 + $0xd0] sm:$0xff] %v1066_v63  ;;  %v1071_v1 = vpop.f32.mrb[9].mxu1  ;;  %v620_v12 = vmul.f32 %v853_v61, %v853_v61 }
 0x10b   : > { %547 = vst [vmem:[%s1024_s18 + $0x40] sm:$0xff] %v444_v0  ;;  %v579_v2 = vadd.f32 %v578_v62, %v444_v0  ;;  %v618_v3 = vmul.f32 %v444_v0, %v444_v0  ;;  %v648_v4 = vadd.f32 %v647_v60, %v617_v59  ;;  %v854_v5 = vpop.f32.mrb[10].mxu0  ;;  %563 = vst [vmem:[%s1024_s18 + $0xc0] sm:$0xff] %v1071_v1  ;;  %v1076_v6 = vpop.f32.mrb[10].mxu1 }
 0x10c   : > { %550 = vst [vmem:[%s1024_s18 + $0x58] sm:$0xff] %v854_v5  ;;  %v447_v7 = vpop.f32.mrb[11].mxu0  ;;  %566 = vst [vmem:[%s1024_s18 + $0xd8] sm:$0xff] %v1076_v6  ;;  %v1081_v8 = vpop.f32.mrb[11].mxu1  ;;  %v621_v15 = vmul.f32 %v854_v5, %v854_v5 }
 0x10d   : > { %v649_v9 = vadd.f32 %v648_v4, %v618_v3  ;;  %548 = vst [vmem:[%s1024_s18 + $0x48] sm:$0xff] %v447_v7  ;;  %v580_v10 = vadd.f32 %v579_v2, %v447_v7  ;;  %v619_v11 = vmul.f32 %v447_v7, %v447_v7  ;;  %564 = vst [vmem:[%s1024_s18 + $0xc8] sm:$0xff] %v1081_v8 }
 0x10f   : > { %v581_v13 = vadd.f32 %v853_v61, %v580_v10  ;;  %v650_v14 = vadd.f32 %v649_v9, %v619_v11  ;;  %v631_v61 = vmul.f32 %v1061_v52, %v1061_v52  ;;  %v635_v9 = vmul.f32 %v1081_v8, %v1081_v8 }
 0x111   : > { %v651_v16 = vadd.f32 %v650_v14, %v620_v12  ;;  %v857_v17 = vpop.f32.mrb[12].mxu0  ;;  %v582_v18 = vadd.f32 %v854_v5, %v581_v13  ;;  %v1086_v19 = vpop.f32.mrb[12].mxu1 }
 0x112   : > { %553 = vst [vmem:[%s1024_s18 + $0x70] sm:$0xff] %v857_v17  ;;  %v460_v20 = vpop.f32.mrb[13].mxu0  ;;  %569 = vst [vmem:[%s1024_s18 + $0xf0] sm:$0xff] %v1086_v19  ;;  %v524_v21 = vpop.f32.mrb[13].mxu1  ;;  %v624_v36 = vmul.f32 %v857_v17, %v857_v17 }
 0x113   : > { %551 = vst [vmem:[%s1024_s18 + $0x60] sm:$0xff] %v460_v20  ;;  %v583_v22 = vadd.f32 %v582_v18, %v460_v20  ;;  %v622_v23 = vmul.f32 %v460_v20, %v460_v20  ;;  %v652_v24 = vadd.f32 %v651_v16, %v621_v15  ;;  %v858_v25 = vpop.f32.mrb[14].mxu0  ;;  %567 = vst [vmem:[%s1024_s18 + $0xe0] sm:$0xff] %v524_v21  ;;  %v874_v27 = vpop.f32.mrb[14].mxu1 }
 0x114   : > { %554 = vst [vmem:[%s1024_s18 + $0x78] sm:$0xff] %v858_v25  ;;  %v463_v29 = vpop.f32.mrb[15].mxu0  ;;  %570 = vst [vmem:[%s1024_s18 + $0xf8] sm:$0xff] %v874_v27  ;;  %v527_v31 = vpop.f32.mrb[15].mxu1  ;;  %v625_v39 = vmul.f32 %v858_v25, %v858_v25 }
 0x115   : > { %v653_v33 = vadd.f32 %v652_v24, %v622_v23  ;;  %552 = vst [vmem:[%s1024_s18 + $0x68] sm:$0xff] %v463_v29  ;;  %v584_v34 = vadd.f32 %v583_v22, %v463_v29  ;;  %v623_v35 = vmul.f32 %v463_v29, %v463_v29  ;;  %568 = vst [vmem:[%s1024_s18 + $0xe8] sm:$0xff] %v527_v31 }
 0x116   : > { %v639_v18 = vmul.f32 %v527_v31, %v527_v31 }
 0x117   : > { %v585_v37 = vadd.f32 %v857_v17, %v584_v34  ;;  %v654_v38 = vadd.f32 %v653_v33, %v623_v35 }
 0x119   : > { %v655_v40 = vadd.f32 %v654_v38, %v624_v36  ;;  %v586_v41 = vadd.f32 %v858_v25, %v585_v37 }
 0x11b   : > { %v587_v44 = vadd.f32 %v586_v41, %v1031_v28  ;;  %v656_v46 = vadd.f32 %v655_v40, %v625_v39  ;;  %v630_v28 = vmul.f32 %v1051_v45, %v1051_v45 }
 0x11d   : > { %v657_v47 = vadd.f32 %v656_v46, %v626_v42  ;;  %v588_v48 = vadd.f32 %v587_v44, %v1041_v32 }
 0x11f   : > { %v589_v53 = vadd.f32 %v1026_v26, %v588_v48  ;;  %v658_v54 = vadd.f32 %v657_v47, %v627_v49  ;;  %v632_v26 = vmul.f32 %v1046_v43, %v1046_v43 }
 0x121   : > { %v659_v56 = vadd.f32 %v658_v54, %v628_v51  ;;  %v590_v57 = vadd.f32 %v1036_v30, %v589_v53  ;;  %v633_v30 = vmul.f32 %v1056_v50, %v1056_v50 }
 0x123   : > { %v591_v58 = vadd.f32 %v590_v57, %v1051_v45  ;;  %v660_v59 = vadd.f32 %v659_v56, %v629_v55  ;;  %v634_v45 = vmul.f32 %v1071_v1, %v1071_v1 }
 0x125   : > { %v661_v60 = vadd.f32 %v660_v59, %v630_v28  ;;  %v592_v32 = vadd.f32 %v591_v58, %v1061_v52 }
 0x127   : > { %v593_v62 = vadd.f32 %v1046_v43, %v592_v32  ;;  %v662_v0 = vadd.f32 %v661_v60, %v631_v61  ;;  %v636_v43 = vmul.f32 %v1066_v63, %v1066_v63 }
 0x129   : > { %v663_v2 = vadd.f32 %v662_v0, %v632_v26  ;;  %v594_v3 = vadd.f32 %v1056_v50, %v593_v62  ;;  %v637_v50 = vmul.f32 %v1076_v6, %v1076_v6 }
 0x12b   : > { %v595_v4 = vadd.f32 %v594_v3, %v1071_v1  ;;  %v664_v5 = vadd.f32 %v663_v2, %v633_v30  ;;  %v638_v1 = vmul.f32 %v524_v21, %v524_v21 }
 0x12d   : > { %v665_v7 = vadd.f32 %v664_v5, %v634_v45  ;;  %v596_v52 = vadd.f32 %v595_v4, %v1081_v8  ;;  %v640_v8 = vmul.f32 %v1086_v19, %v1086_v19 }
 0x12f   : > { %v597_v10 = vadd.f32 %v1066_v63, %v596_v52  ;;  %v666_v11 = vadd.f32 %v665_v7, %v635_v9  ;;  %v641_v63 = vmul.f32 %v874_v27, %v874_v27 }
 0x131   : > { %v667_v12 = vadd.f32 %v666_v11, %v636_v43  ;;  %v598_v13 = vadd.f32 %v1076_v6, %v597_v10 }
 0x133   : > { %v599_v14 = vadd.f32 %v598_v13, %v524_v21  ;;  %v668_v15 = vadd.f32 %v667_v12, %v637_v50 }
 0x135   : > { %v669_v16 = vadd.f32 %v668_v15, %v638_v1  ;;  %v600_v17 = vadd.f32 %v599_v14, %v527_v31 }
 0x137   : > { %v601_v20 = vadd.f32 %v1086_v19, %v600_v17  ;;  %v670_v22 = vadd.f32 %v669_v16, %v639_v18 }
 0x139   : > { %v602_v23 = vadd.f32 %v874_v27, %v601_v20  ;;  %v671_v24 = vadd.f32 %v670_v22, %v640_v8 }
 0x13b   : > { %v603_v25 = vrot.slane %v602_v23, 4  ;;  %v672_v29 = vadd.f32 %v671_v24, %v641_v63 }
 0x13d   : > { %v604_v6 = vadd.f32 %v603_v25, %v602_v23  ;;  %v673_v33 = vrot.slane %v672_v29, 4 }
 0x13f   : > { %v605_v21 = vrot.slane %v604_v6, 2  ;;  %v674_v34 = vadd.f32 %v673_v33, %v672_v29 }
 0x141   : > { %v606_v35 = vadd.f32 %v605_v21, %v604_v6  ;;  %v675_v36 = vrot.slane %v674_v34, 2 }
 0x143   : > { %v607_v31 = vrot.slane %v606_v35, 1  ;;  %v676_v37 = vadd.f32 %v675_v36, %v674_v34 }
 0x145   : > { %v608_v38 = vadd.f32 %v607_v31, %v606_v35  ;;  %v677_v39 = vrot.slane %v676_v37, 1 }
 0x147   : > { %609 = vst [vmem:[%s1017_s11] sm:$0x1] %v608_v38  ;;  %v678_v19 = vadd.f32 %v677_v39, %v676_v37 }
 0x149   : > { %679 = vst [vmem:[%s1017_s11 + $0x1] sm:$0x1] %v678_v19 }
 0x14a PF: > { %s14_s12 = sadd.s32 1, %s930_s12  }
 0x14b   : > { %p11_p5 = scmp.ge.s32.totalorder %s14_s12, 4  }
 0x14d   :  { %13 = sbr.rel (!%p11_p5) target bundleno = 1 (0x1), region = 70 }

// kernel: multiple_conv2d_block_forward.7
= control target key start
LH: loop header
LB: loop body
LE: loop exit
PB: predicated region body
PF: predicated region fallthrough
CT: control target
= control target key end

     0   :  { %s453_s12 = smov 0   ;;  %s612_s0 = inlined_call_operand.vmem [shape: f32[512,128], index: 0, kind: input, shape index: {}]   ;;  %s613_s1 = inlined_call_operand.vmem [shape: f32[1,128], index: 1, kind: input, shape index: {}]   ;;  %s614_s2 = inlined_call_operand.vmem [shape: f32[1,128], index: 2, kind: input, shape index: {}]   ;;  %s615_s3 = inlined_call_operand.vmem [shape: f32[512,128], index: 3, kind: output, shape index: {}]  }
   0x1 LB: > { %s404_s13 = sadd.s32 4294967295, %s431_s12   ;;  %p408_p0 = scmp.ge.s32.totalorder %s431_s12, 1  ;;  %s431_s12 = sphi %s453_s12, %s13_s12  }
   0x2   : > { %p138_p1 = scmp.lt.s32.totalorder %s431_s12, 3 }
   0x4   : > { %p139_p2 = pnand %p408_p0, %p138_p1 }
   0x5   : > { %s409_s14 = sshll.u32 (!%p139_p2), %s404_s13, 5  ;;  %v464_v0 = vld [vmem:[%s613_s1] ss:$0 sm:$0xff] (!%p139_p2) }
   0x6   : > { %142 = sbr.rel (%p139_p2) target bundleno = 46 (0x2e), region = 32  ;;  %p163_p3 = scmp.lt.s32.totalorder (!%p139_p2), %s409_s14, 63  ;;  %v474_v1 = vld [vmem:[%s614_s2] ss:$0 sm:$0xff] (!%p139_p2) }
   0xd   : > { %s617_s14 = smov (!%p163_p3, %s409_s14), 63 }
   0xe   : > { %s410_s15 = sshll.u32 %s617_s14, 3 }
   0xf   : > { %s469_s20 = scalar_lea.vmem %s612_s0, %s410_s15  ;;  %s497_s25 = scalar_lea.vmem %s615_s3, %s410_s15 }
  0x10   : > { %v174_v2 = vld [vmem:[%s469_s20] sm:$0xff]  ;;  %v175_v3 = vld [vmem:[%s469_s20 + $0x8] sm:$0xff]  ;;  %v176_v4 = vld [vmem:[%s469_s20 + $0x10] sm:$0xff] }
  0x11   : > { %v213_v5 = vmul.f32 %v464_v0, %v174_v2  ;;  %v214_v6 = vmul.f32 %v464_v0, %v175_v3  ;;  %v215_v7 = vmul.f32 %v464_v0, %v176_v4  ;;  %v177_v8 = vld [vmem:[%s469_s20 + $0x18] sm:$0xff]  ;;  %v178_v9 = vld [vmem:[%s469_s20 + $0x20] sm:$0xff]  ;;  %v179_v10 = vld [vmem:[%s469_s20 + $0x28] sm:$0xff] }
  0x12   : > { %v216_v11 = vmul.f32 %v464_v0, %v177_v8  ;;  %v217_v12 = vmul.f32 %v464_v0, %v178_v9  ;;  %v218_v13 = vmul.f32 %v464_v0, %v179_v10  ;;  %v180_v14 = vld [vmem:[%s469_s20 + $0x30] sm:$0xff]  ;;  %v181_v15 = vld [vmem:[%s469_s20 + $0x38] sm:$0xff]  ;;  %v182_v24 = vld [vmem:[%s469_s20 + $0x40] sm:$0xff] }
  0x13   : > { %v252_v16 = vadd.f32 %v474_v1, %v213_v5  ;;  %v253_v17 = vadd.f32 %v474_v1, %v214_v6  ;;  %v254_v18 = vadd.f32 %v474_v1, %v215_v7  ;;  %v219_v19 = vmul.f32 %v464_v0, %v180_v14  ;;  %v183_v25 = vld [vmem:[%s469_s20 + $0x48] sm:$0xff]  ;;  %v184_v26 = vld [vmem:[%s469_s20 + $0x50] sm:$0xff]  ;;  %v185_v31 = vld [vmem:[%s469_s20 + $0x58] sm:$0xff] }
  0x14   : > { %v255_v20 = vadd.f32 %v474_v1, %v216_v11  ;;  %v256_v21 = vadd.f32 %v474_v1, %v217_v12  ;;  %v257_v22 = vadd.f32 %v474_v1, %v218_v13  ;;  %v220_v23 = vmul.f32 %v464_v0, %v181_v15  ;;  %v186_v32 = vld [vmem:[%s469_s20 + $0x60] sm:$0xff]  ;;  %v187_v33 = vld [vmem:[%s469_s20 + $0x68] sm:$0xff]  ;;  %v188_v38 = vld [vmem:[%s469_s20 + $0x70] sm:$0xff] }
  0x15   : > { %v284_v27 = vmax.f32 %v252_v16, 0.0  ;;  %v285_v28 = vmax.f32 %v253_v17, 0.0  ;;  %v286_v29 = vmax.f32 %v254_v18, 0.0  ;;  %v258_v30 = vadd.f32 %v474_v1, %v219_v19  ;;  %v189_v43 = vld [vmem:[%s469_s20 + $0x78] sm:$0xff]  ;;  %v190_v56 = vld [vmem:[%s469_s20 + $0x80] sm:$0xff]  ;;  %v191_v57 = vld [vmem:[%s469_s20 + $0x88] sm:$0xff] }
  0x16   : > { %v287_v34 = vmax.f32 %v255_v20, 0.0  ;;  %v288_v35 = vmax.f32 %v256_v21, 0.0  ;;  %v289_v36 = vmax.f32 %v257_v22, 0.0  ;;  %v259_v37 = vadd.f32 %v474_v1, %v220_v23  ;;  %v192_v58 = vld [vmem:[%s469_s20 + $0x90] sm:$0xff]  ;;  %v193_v63 = vld [vmem:[%s469_s20 + $0x98] sm:$0xff]  ;;  %v194_v2 = vld [vmem:[%s469_s20 + $0xa0] sm:$0xff] }
  0x17   : > { %316 = vst [vmem:[%s497_s25] sm:$0xff] %v284_v27  ;;  %317 = vst [vmem:[%s497_s25 + $0x8] sm:$0xff] %v285_v28  ;;  %v290_v39 = vmax.f32 %v258_v30, 0.0  ;;  %v221_v40 = vmul.f32 %v464_v0, %v182_v24  ;;  %v222_v41 = vmul.f32 %v464_v0, %v183_v25  ;;  %v223_v42 = vmul.f32 %v464_v0, %v184_v26  ;;  %v195_v3 = vld [vmem:[%s469_s20 + $0xa8] sm:$0xff]  ;;  %v196_v8 = vld [vmem:[%s469_s20 + $0xb0] sm:$0xff] }
  0x18   : > { %318 = vst [vmem:[%s497_s25 + $0x10] sm:$0xff] %v286_v29  ;;  %319 = vst [vmem:[%s497_s25 + $0x18] sm:$0xff] %v287_v34  ;;  %v291_v44 = vmax.f32 %v259_v37, 0.0  ;;  %v224_v45 = vmul.f32 %v464_v0, %v185_v31  ;;  %v225_v46 = vmul.f32 %v464_v0, %v186_v32  ;;  %v226_v47 = vmul.f32 %v464_v0, %v187_v33  ;;  %v197_v13 = vld [vmem:[%s469_s20 + $0xb8] sm:$0xff]  ;;  %v198_v26 = vld [vmem:[%s469_s20 + $0xc0] sm:$0xff] }
  0x19   : > { %320 = vst [vmem:[%s497_s25 + $0x20] sm:$0xff] %v288_v35  ;;  %321 = vst [vmem:[%s497_s25 + $0x28] sm:$0xff] %v289_v36  ;;  %v260_v48 = vadd.f32 %v474_v1, %v221_v40  ;;  %v261_v49 = vadd.f32 %v474_v1, %v222_v41  ;;  %v262_v50 = vadd.f32 %v474_v1, %v223_v42  ;;  %v199_v27 = vld [vmem:[%s469_s20 + $0xc8] sm:$0xff]  ;;  %v200_v28 = vld [vmem:[%s469_s20 + $0xd0] sm:$0xff] }
  0x1a   : > { %322 = vst [vmem:[%s497_s25 + $0x30] sm:$0xff] %v290_v39  ;;  %v227_v51 = vmul.f32 %v464_v0, %v188_v38  ;;  %323 = vst [vmem:[%s497_s25 + $0x38] sm:$0xff] %v291_v44  ;;  %v263_v52 = vadd.f32 %v474_v1, %v224_v45  ;;  %v264_v53 = vadd.f32 %v474_v1, %v225_v46  ;;  %v201_v33 = vld [vmem:[%s469_s20 + $0xd8] sm:$0xff]  ;;  %v202_v34 = vld [vmem:[%s469_s20 + $0xe0] sm:$0xff] }
  0x1b   : > { %v265_v54 = vadd.f32 %v474_v1, %v226_v47  ;;  %v228_v55 = vmul.f32 %v464_v0, %v189_v43  ;;  %v292_v59 = vmax.f32 %v260_v48, 0.0  ;;  %v293_v60 = vmax.f32 %v261_v49, 0.0  ;;  %v203_v35 = vld [vmem:[%s469_s20 + $0xe8] sm:$0xff]  ;;  %v204_v40 = vld [vmem:[%s469_s20 + $0xf0] sm:$0xff]  ;;  %v205_v45 = vld [vmem:[%s469_s20 + $0xf8] sm:$0xff] }
  0x1c   : > { %v294_v61 = vmax.f32 %v262_v50, 0.0  ;;  %v266_v62 = vadd.f32 %v474_v1, %v227_v51  ;;  %v295_v4 = vmax.f32 %v263_v52, 0.0  ;;  %v296_v5 = vmax.f32 %v264_v53, 0.0 }
  0x1d   : > { %v297_v6 = vmax.f32 %v265_v54, 0.0  ;;  %v267_v7 = vadd.f32 %v474_v1, %v228_v55  ;;  %324 = vst [vmem:[%s497_s25 + $0x40] sm:$0xff] %v292_v59  ;;  %325 = vst [vmem:[%s497_s25 + $0x48] sm:$0xff] %v293_v60  ;;  %v229_v10 = vmul.f32 %v464_v0, %v190_v56  ;;  %v230_v11 = vmul.f32 %v464_v0, %v191_v57 }
  0x1e   : > { %326 = vst [vmem:[%s497_s25 + $0x50] sm:$0xff] %v294_v61  ;;  %v298_v9 = vmax.f32 %v266_v62, 0.0  ;;  %v231_v12 = vmul.f32 %v464_v0, %v192_v58  ;;  %327 = vst [vmem:[%s497_s25 + $0x58] sm:$0xff] %v295_v4  ;;  %v232_v15 = vmul.f32 %v464_v0, %v193_v63  ;;  %v233_v16 = vmul.f32 %v464_v0, %v194_v2 }
  0x1f   : > { %328 = vst [vmem:[%s497_s25 + $0x60] sm:$0xff] %v296_v5  ;;  %329 = vst [vmem:[%s497_s25 + $0x68] sm:$0xff] %v297_v6  ;;  %v299_v14 = vmax.f32 %v267_v7, 0.0  ;;  %v234_v17 = vmul.f32 %v464_v0, %v195_v3  ;;  %v268_v18 = vadd.f32 %v474_v1, %v229_v10  ;;  %v269_v19 = vadd.f32 %v474_v1, %v230_v11 }
  0x20   : > { %330 = vst [vmem:[%s497_s25 + $0x70] sm:$0xff] %v298_v9  ;;  %v270_v20 = vadd.f32 %v474_v1, %v231_v12  ;;  %v235_v21 = vmul.f32 %v464_v0, %v196_v8  ;;  %v271_v22 = vadd.f32 %v474_v1, %v232_v15  ;;  %v272_v23 = vadd.f32 %v474_v1, %v233_v16 }
  0x21   : > { %331 = vst [vmem:[%s497_s25 + $0x78] sm:$0xff] %v299_v14  ;;  %v273_v24 = vadd.f32 %v474_v1, %v234_v17  ;;  %v236_v25 = vmul.f32 %v464_v0, %v197_v13  ;;  %v300_v29 = vmax.f32 %v268_v18, 0.0  ;;  %v301_v30 = vmax.f32 %v269_v19, 0.0 }
  0x22   : > { %v302_v31 = vmax.f32 %v270_v20, 0.0  ;;  %v274_v32 = vadd.f32 %v474_v1, %v235_v21  ;;  %v303_v36 = vmax.f32 %v271_v22, 0.0  ;;  %v304_v37 = vmax.f32 %v272_v23, 0.0 }
  0x23   : > { %v305_v38 = vmax.f32 %v273_v24, 0.0  ;;  %v275_v39 = vadd.f32 %v474_v1, %v236_v25  ;;  %332 = vst [vmem:[%s497_s25 + $0x80] sm:$0xff] %v300_v29  ;;  %333 = vst [vmem:[%s497_s25 + $0x88] sm:$0xff] %v301_v30  ;;  %v237_v42 = vmul.f32 %v464_v0, %v198_v26  ;;  %v238_v43 = vmul.f32 %v464_v0, %v199_v27 }
  0x24   : > { %334 = vst [vmem:[%s497_s25 + $0x90] sm:$0xff] %v302_v31  ;;  %v306_v41 = vmax.f32 %v274_v32, 0.0  ;;  %v239_v44 = vmul.f32 %v464_v0, %v200_v28  ;;  %335 = vst [vmem:[%s497_s25 + $0x98] sm:$0xff] %v303_v36  ;;  %v240_v47 = vmul.f32 %v464_v0, %v201_v33  ;;  %v241_v48 = vmul.f32 %v464_v0, %v202_v34 }
  0x25   : > { %336 = vst [vmem:[%s497_s25 + $0xa0] sm:$0xff] %v304_v37  ;;  %337 = vst [vmem:[%s497_s25 + $0xa8] sm:$0xff] %v305_v38  ;;  %v307_v46 = vmax.f32 %v275_v39, 0.0  ;;  %v242_v49 = vmul.f32 %v464_v0, %v203_v35  ;;  %v276_v50 = vadd.f32 %v474_v1, %v237_v42  ;;  %v277_v51 = vadd.f32 %v474_v1, %v238_v43 }
  0x26   : > { %338 = vst [vmem:[%s497_s25 + $0xb0] sm:$0xff] %v306_v41  ;;  %v278_v52 = vadd.f32 %v474_v1, %v239_v44  ;;  %v243_v53 = vmul.f32 %v464_v0, %v204_v40  ;;  %v279_v54 = vadd.f32 %v474_v1, %v240_v47  ;;  %v280_v55 = vadd.f32 %v474_v1, %v241_v48 }
  0x27   : > { %339 = vst [vmem:[%s497_s25 + $0xb8] sm:$0xff] %v307_v46  ;;  %v281_v56 = vadd.f32 %v474_v1, %v242_v49  ;;  %v244_v57 = vmul.f32 %v464_v0, %v205_v45  ;;  %v308_v58 = vmax.f32 %v276_v50, 0.0  ;;  %v309_v59 = vmax.f32 %v277_v51, 0.0 }
  0x28   : > { %v310_v60 = vmax.f32 %v278_v52, 0.0  ;;  %v282_v61 = vadd.f32 %v474_v1, %v243_v53  ;;  %v311_v62 = vmax.f32 %v279_v54, 0.0  ;;  %v312_v63 = vmax.f32 %v280_v55, 0.0 }
  0x29   : > { %v313_v2 = vmax.f32 %v281_v56, 0.0  ;;  %v283_v3 = vadd.f32 %v474_v1, %v244_v57  ;;  %340 = vst [vmem:[%s497_s25 + $0xc0] sm:$0xff] %v308_v58  ;;  %341 = vst [vmem:[%s497_s25 + $0xc8] sm:$0xff] %v309_v59 }
  0x2a   : > { %342 = vst [vmem:[%s497_s25 + $0xd0] sm:$0xff] %v310_v60  ;;  %v314_v4 = vmax.f32 %v282_v61, 0.0  ;;  %343 = vst [vmem:[%s497_s25 + $0xd8] sm:$0xff] %v311_v62 }
  0x2b   : > { %344 = vst [vmem:[%s497_s25 + $0xe0] sm:$0xff] %v312_v63  ;;  %345 = vst [vmem:[%s497_s25 + $0xe8] sm:$0xff] %v313_v2  ;;  %v315_v0 = vmax.f32 %v283_v3, 0.0 }
  0x2c   : > { %346 = vst [vmem:[%s497_s25 + $0xf0] sm:$0xff] %v314_v4 }
  0x2d   : > { %347 = vst [vmem:[%s497_s25 + $0xf8] sm:$0xff] %v315_v0 }
  0x2e PF: > { %s13_s12 = sadd.s32 1, %s431_s12  }
  0x2f   : > { %p10_p4 = scmp.ge.s32.totalorder %s13_s12, 4  }
  0x31   :  { %12 = sbr.rel (!%p10_p4) target bundleno = 1 (0x1), region = 62 }

</bundles_post_ra>
